<compile_context>
chip_gen: v5e
topology: v5e:2x2
jax: 0.10.0
libtpu: 0.0.40
codegen_flags: <defaults>
</compile_context>

<pallas_src>
import jax
import jax.numpy as jnp
from jax.experimental import pallas as pl
from jax.experimental.pallas import tpu as pltpu

LANES = 128
SUBLANES = 8


def _swish_kernel(x_ref, o_ref):
    # Elementwise Swish.  Upcast to f32: exp lands on the EUP and mul on the VPU,
    # both with huge slack at the memory-bound operating point, so the upcast is
    # free wall-clock and improves sub-32-bit accuracy.
    x32 = x_ref[...].astype(jnp.float32)
    sig = 1.0 / (1.0 + jnp.exp(-x32))  # sigmoid, written with jnp.exp for robust lowering
    o_ref[...] = (x32 * sig).astype(o_ref.dtype)


def _round_up(a: int, b: int) -> int:
    return ((a + b - 1) // b) * b


def _vmem_capacity_bytes() -> int:
    """Physical VMEM of the current chip; conservative (v7x) fallback."""
    try:
        info = pltpu.get_tpu_info()
        vmem = getattr(info, "vmem_capacity_bytes", None)
        if vmem:
            return int(vmem)
    except Exception:
        pass
    return 64 << 20  # v7x per-TensorCore VMEM (smallest of v5e/v6e/v7x)


def swish(
    x: jnp.ndarray,
    *,
    target_block_bytes: int | None = None,
    min_pallas_bytes: int = 256 << 10,
    donate: bool = False,
) -> jnp.ndarray:
    """Elementwise Swish via Pallas. Matches torch: inputs * inputs.sigmoid()."""
    orig_shape = x.shape
    orig_dtype = x.dtype
    n = x.size
    if n == 0:
        return x

    itemsize = jnp.dtype(orig_dtype).itemsize

    # Small-input fast path: pallas_call launch + pipeline prologue dominate tiny
    # tensors; XLA's fused elementwise is faster and skips the reshape machinery.
    if n * itemsize < min_pallas_bytes:
        x32 = x.astype(jnp.float32)
        return (x32 * (1.0 / (1.0 + jnp.exp(-x32)))).astype(orig_dtype)

    # Per-generation sizing from physical VMEM (right-sized on both 64 MiB v7x
    # and 128 MiB v5e/v6e chips).
    vmem_bytes = _vmem_capacity_bytes()
    if target_block_bytes is None:
        target_block_bytes = max(2 << 20, vmem_bytes // 16)  # 4 MiB v7x, 8 MiB v5e/v6e
    vmem_limit_bytes = vmem_bytes // 2                        # 32 MiB v7x, 64 MiB v5e/v6e

    # dtype-aware packed-sublane tile: 8 rows f32, 16 bf16, 32 int8/fp8.
    packing = max(1, 4 // itemsize)
    sub_align = SUBLANES * packing

    # Lane alignment only: the (rows, 128) view needs n % 128 == 0.  Pallas masks
    # the partial last (tr, 128) block, so no sublane padding is required and the
    # common conv-activation path stays copy-free; the pad + trailing-slice copies
    # (extra HBM traffic) now only hit when n is not a multiple of 128.
    n_pad = (-n) % LANES
    x_flat = jnp.reshape(x, (-1,))
    if n_pad:
        # swish(0) == 0 and the padded tail is sliced off below.
        x_flat = jnp.pad(x_flat, (0, n_pad))
    rows = (n + n_pad) // LANES
    x2d = jnp.reshape(x_flat, (rows, LANES))

    # Block rows: ~target_block_bytes, rounded down to the packed-sublane tile.
    tile_rows = max(
        sub_align,
        (target_block_bytes // (LANES * itemsize)) // sub_align * sub_align,
    )

    if rows > tile_rows:
        tr = tile_rows
    elif rows >= 2 * sub_align:
        # Guarantee >= 2 grid steps so both v7x TensorCores (grid axis is
        # "parallel") split the HBM stream; negligible cost on 1-TC chips.
        tr = min(_round_up(pl.cdiv(rows, 2), sub_align), rows)
    else:
        tr = rows  # single full-extent block (no (8,128) divisibility needed)

    grid = (pl.cdiv(rows, tr),)

    extra_kwargs = {}
    if donate:
        # Caller-donated buffer: lets XLA write the result in place.
        extra_kwargs["input_output_aliases"] = {0: 0}

    out2d = pl.pallas_call(
        _swish_kernel,
        out_shape=jax.ShapeDtypeStruct((rows, LANES), orig_dtype),
        grid_spec=pltpu.PrefetchScalarGridSpec(
            num_scalar_prefetch=0,
            grid=grid,
            in_specs=[pl.BlockSpec((tr, LANES), lambda i: (i, 0))],
            out_specs=pl.BlockSpec((tr, LANES), lambda i: (i, 0)),
        ),
        compiler_params=pltpu.CompilerParams(
            dimension_semantics=("parallel",),
            vmem_limit_bytes=vmem_limit_bytes,
        ),
        **extra_kwargs,
    )(x2d)

    out_flat = jnp.reshape(out2d, (-1,))
    if n_pad:
        out_flat = out_flat[:n]
    return jnp.reshape(out_flat, orig_shape)


if __name__ == "__main__":
    key = jax.random.PRNGKey(0)
    # NCHW activation, consistent with typical conv-block usage of Swish.
    x = jax.random.normal(key, (2, 4, 16, 16), dtype=jnp.float32)

    def ref_swish(v):
        v32 = v.astype(jnp.float32)
        return (v32 * jax.nn.sigmoid(v32)).astype(v.dtype)

    # Force the Pallas path (the default small-input fast path would bypass the
    # kernel for this tiny test tensor).
    out = jax.block_until_ready(swish(x, min_pallas_bytes=0))
    assert out.shape == x.shape and out.dtype == x.dtype
    assert jnp.allclose(out, ref_swish(x), atol=1e-5, rtol=1e-5)

    # Ragged size: exercises the lane-pad + masked partial-block path.
    y = jax.random.normal(jax.random.PRNGKey(1), (5, 7, 13), dtype=jnp.float32)
    out_y = jax.block_until_ready(swish(y, min_pallas_bytes=0))
    assert out_y.shape == y.shape and out_y.dtype == y.dtype
    assert jnp.allclose(out_y, ref_swish(y), atol=1e-5, rtol=1e-5)

    # Default call: small input takes the fused-XLA fast path.
    out_fast = jax.block_until_ready(swish(x))
    assert jnp.allclose(out_fast, ref_swish(x), atol=1e-5, rtol=1e-5)

    print("KERNEL_OK")
</pallas_src>

<mosaic_0001>
module attributes {stable_mosaic.version = 11 : i64} {
  func.func @_swish_kernel(%arg0: i32, %arg1: memref<8x128xf32, #tpu.memory_space<vmem>>, %arg2: memref<8x128xf32, #tpu.memory_space<vmem>>) attributes {dimension_semantics = [#tpu.dimension_semantics<parallel>], iteration_bounds = array<i64: 2>, scalar_prefetch = 0 : i64, scratch_operands = 0 : i64, tpu.core_type = #tpu.core_type<tc>, window_params = [{transform_indices = @transform_0, window_bounds = array<i64: 8, 128>}, {transform_indices = @transform_1, window_bounds = array<i64: 8, 128>}]} {
    %c0 = arith.constant 0 : index
    %c0_0 = arith.constant 0 : index
    %0 = vector.load %arg1[%c0, %c0_0] : memref<8x128xf32, #tpu.memory_space<vmem>>, vector<8x128xf32>
    %cst = arith.constant 0.000000e+00 : f32
    %1 = vector.broadcast %cst : f32 to vector<8x128xf32>
    %2 = arith.subf %1, %0 : vector<8x128xf32>
    %3 = math.exp %2 : vector<8x128xf32>
    %cst_1 = arith.constant 1.000000e+00 : f32
    %4 = vector.broadcast %cst_1 : f32 to vector<8x128xf32>
    %5 = arith.addf %4, %3 : vector<8x128xf32>
    %cst_2 = arith.constant 1.000000e+00 : f32
    %6 = vector.broadcast %cst_2 : f32 to vector<8x128xf32>
    %7 = arith.divf %6, %5 : vector<8x128xf32>
    %8 = arith.mulf %0, %7 : vector<8x128xf32>
    %c0_3 = arith.constant 0 : index
    %c0_4 = arith.constant 0 : index
    %9 = vector.load %arg2[%c0_3, %c0_4] : memref<8x128xf32, #tpu.memory_space<vmem>>, vector<8x128xf32>
    tpu.vector_store %arg2[%c0_3, %c0_4], %8 {strides = array<i32>} : memref<8x128xf32, #tpu.memory_space<vmem>>, vector<8x128xf32>,
    return
  }
  func.func @transform_0(%arg0: i32) -> (i32, i32) {
    %c0_i32 = arith.constant 0 : i32
    %c0_i32_0 = arith.constant 0 : i32
    return %arg0, %c0_i32 : i32, i32
  }
  func.func @transform_1(%arg0: i32) -> (i32, i32) {
    %c0_i32 = arith.constant 0 : i32
    %c0_i32_0 = arith.constant 0 : i32
    return %arg0, %c0_i32 : i32, i32
  }
}

</mosaic_0001>

<bundles_post_ra>
// kernel: tpu_custom_call.1
= control target key start
LH: loop header
LB: loop body
LE: loop exit
PB: predicated region body
PF: predicated region fallthrough
CT: control target
= control target key end

     0   :  { %6 = vsyncpa [#allocation3], 0  ;;  %s539_s0 = inlined_call_operand.hbm [shape: f32[16,128], index: 0, kind: input, shape index: {}]   ;;  %s540_s1 = inlined_call_operand.hbm [shape: f32[16,128], index: 1, kind: output, shape index: {}]  }
   0x1   :  { %8 = vsyncpa [#allocation3 + $0x1], 0 }
   0x2   :  { %9 = vsyncpa [#allocation4], 0 }
   0x3   :  { %11 = vsyncpa [#allocation4 + $0x1], 0  ;;  %s412_s6 = smov 0   ;;  %s414_s7 = smov 0  }
   0x4   :  { %s416_s8 = smov 0   ;;  %s418_s9 = smov 0  }
   0x5 LB: > { %s433_s10 = sadd.s32 4294967295, %s400_s9   ;;  %s242_s11 = sadd.s32 4294967294, %s400_s9   ;;  %s400_s9 = sphi %s418_s9, %s550_s9   ;;  %s396_s8 = sphi %s416_s8, %s549_s8   ;;  %s392_s7 = sphi %s414_s7, %s548_s7   ;;  %s388_s6 = sphi %s412_s6, %s547_s6  }
   0x6   : > { %s437_s12 = sadd.s32 1, %s400_s9   ;;  %s24_s13 = sadd.s32 1, %s396_s8 }
   0x7   : > { %s21_s14 = ssub.s32 %s400_s9, %s437_s12  ;;  %p31_p0 = scmp.ne.s32.totalorder %s396_s8, %s392_s7 }
   0x8   : > { %p22_p1 = scmp.eq.s32.totalorder %s21_s14, 0  ;;  %p32_p2 = scmp.eq.s32.totalorder %s400_s9, 0 }
   0x9   : > { %p37_p3 = scmp.ne.s32.totalorder %s392_s7, %s388_s6  ;;  %p38_p4 = scmp.eq.s32.totalorder %s433_s10, 0 }
   0xa   : > { %s449_s15 = scalar_select %p22_p1, %s396_s8, %s24_s13  }
   0xb   : > { %p451_p5 = por %p32_p2, %p31_p0  ;;  %p455_p6 = por %p38_p4, %p37_p3 }
   0xc   : > { %p61_p7 = scmp.eq.s32.totalorder %s433_s10, 1  ;;  %p67_p8 = scmp.eq.s32.totalorder %s242_s11, 1 }
   0xd   : > { %p266_p10 = scmp.lt.s32.totalorder %s400_s9, 2  ;;  %s87_s20 = sand.u32 1, %s396_s8  }
   0xe   : > { %p462_p11 = por %p61_p7, %p31_p0  ;;  %p466_p12 = por %p67_p8, %p37_p3 }
   0xf   : > { %s246_s21 = sshll.u32 %s400_s9, 3  ;;  %s245_s22 = sshll.u32 %s87_s20, 3 }
  0x10   : > { %s95_s25 = scalar_lea.hbm %s539_s0, %s246_s21  ;;  %s91_s27 = scalar_lea.vmem [#allocation2], %s245_s22 }
  0x11   : > { %s97_s26 = sshll.u32 %s95_s25, 4  ;;  %s99_s28 = sshll.u32 %s91_s27, 4  ;;  %s98_s26 = int_to_ptr.hbm [resolvable:$true] %s97_s26  ;;  %s100_s28 = int_to_ptr.vmem [resolvable:$true] %s99_s28 }
  0x12   : > { %p477_p13 = pnand %p266_p10, %p451_p5  ;;  %p247_p0 = scmp.ge.s32.totalorder %s400_s9, 1 }
  0x13   : > { %p104_p1 = scmp.lt.s32.totalorder %s400_s9, 3  ;;  %s88_s30 = scalar_lea.sflag [#allocation3], %s87_s20 }
  0x14   : > { %s304_s2 = sshra.s32 %s98_s26, 4  ;;  %p308_p3 = pneg %p477_p13  ;;  %s305_s2 = int_to_ptr.hbm [resolvable:$true] %s304_s2 }
  0x15   : > { %s306_s3 = scalar_lea.hbm %s305_s2, 8  ;;  %s311_s11 = scalar_lea.hbm %s539_s0, 16 }
  0x16   : > { %p307_p2 = scmp.ne.s32.totalorder %s305_s2, %s306_s3  ;;  %p312_p5 = scmp.lt.s32.totalorder %s305_s2, %s539_s0 }
  0x17   : > { %p313_p8 = scmp.lt.s32.totalorder %s311_s11, %s306_s3 }
  0x18   : > { %p309_p4 = pnand %p308_p3, %p307_p2 }
  0x19   : > { %p314_p10 = por %p313_p8, %p312_p5 }
  0x1a   : > { %p310_p7 = pneg %p309_p4 }
  0x1c   : > { %p315_p9 = pnand %p314_p10, %p310_p7 }
  0x1e   : > { %318 = shalt.err (!%p315_p9)
}
  0x1f   : > { %261 = dma.hbm_to_vmem [thread:$0]  (!%p477_p13), %s98_s26, 128, %s100_s28, %s88_s30  }
  0x20   : > { %p105_p2 = pnand %p247_p0, %p104_p1 }
  0x21   : > { %s498_s16 = sand.u32 (!%p105_p2), 1, %s392_s7  }
  0x22   : > { %108 = sbr.rel (%p105_p2) target bundleno = 76 (0x4c), region = 24  ;;  %s248_s20 = sshll.u32 (!%p105_p2), %s498_s16, 3 }
  0x23   : > { %s111_s21 = scalar_lea.sflag (!%p105_p2), [#allocation3], %s498_s16  ;;  %s114_s22 = scalar_lea.vmem (!%p105_p2), [#allocation2], %s248_s20 }
  0x27   : > { %379 = dma.done.wait (%p455_p6), %s111_s21, 128  }
  0x28   : > { %381 = vsyncadd (%p455_p6), %s111_s21, 4294967168  ;;  %v134_v0 = vld [vmem:[%s114_s22] sm:$0xff]  ;;  %s251_s23 = sshll.u32 %s433_s10, 3  ;;  %s133_s26 = scalar_lea.vmem [#allocation5], %s248_s20 }
  0x29   : > { %v135_v1 = vsub.f32 0.0, %v134_v0  ;;  %s167_s25 = scalar_lea.hbm %s540_s1, %s251_s23  ;;  %s169_s27 = sshll.u32 %s133_s26, 4  ;;  %s170_s27 = int_to_ptr.vmem [resolvable:$true] %s169_s27 }
  0x2a   : > { %s171_s28 = sshll.u32 %s167_s25, 4  ;;  %s157_s10 = scalar_lea.sflag [#allocation4], %s498_s16  ;;  %s172_s28 = int_to_ptr.hbm [resolvable:$true] %s171_s28 }
  0x2b   : > { %v136_v2 = vmul.f32 1.442695, %v135_v1  ;;  %s348_s29 = sshra.s32 %s172_s28, 4  ;;  %s354_s4 = scalar_lea.hbm %s540_s1, 16  ;;  %s349_s29 = int_to_ptr.hbm [resolvable:$true] %s348_s29 }
  0x2c   : > { %s350_s30 = scalar_lea.hbm %s349_s29, 8  ;;  %p355_p0 = scmp.lt.s32.totalorder %s349_s29, %s540_s1 }
  0x2d   : > { %300 = vpow2.f32 %v136_v2  ;;  %p351_p6 = scmp.ne.s32.totalorder %s349_s29, %s350_s30  ;;  %p356_p1 = scmp.lt.s32.totalorder %s354_s4, %s350_s30 }
  0x2f   : > { %p352_p9 = pnand %p351_p6, %p462_p11  ;;  %p357_p3 = por %p356_p1, %p355_p0 }
  0x31   : > { %p353_p13 = pneg %p352_p9 }
  0x33   : > { %v301_v3 = vpop.eup %300  ;;  %p358_p4 = pnand %p357_p3, %p353_p13 }
  0x34   : > { %v138_v4 = vadd.f32 1.0, %v301_v3 }
  0x36   : > { %302 = vrcp.f32 %v138_v4  ;;  %v150_v7 = vand.u32 2147483648, %v138_v4  ;;  %vm144_vm0 = vweird.f32 %v138_v4  ;;  %v148_v9 = vand.u32 2147483647, %v138_v4 }
  0x38   : > { %v151_v11 = vor.u32 1.1754944e-38, %v150_v7  ;;  %vm149_vm3 = vcmp.eq.f32.partialorder %v148_v9, 8.507059e+37 }
  0x3c   : > { %v303_v5 = vpop.eup %302 }
  0x3d   : > { %v140_v6 = vmul.f32 %v303_v5, %v138_v4  ;;  %vm145_vm1 = vweird.f32 %v303_v5 }
  0x3e   : > { %vm146_vm2 = vmor %vm144_vm0, %vm145_vm1 }
  0x3f   : > { %v141_v8 = vsub.f32 1.0, %v140_v6 }
  0x41   : > { %v142_v10 = vmul.f32 %v303_v5, %v141_v8 }
  0x43   : > { %v143_v12 = vadd.f32 %v303_v5, %v142_v10 }
  0x45   : > { %v147_v13 = vsel %vm146_vm2, %v303_v5, %v143_v12 }
  0x46   : > { %v152_v14 = vsel %vm149_vm3, %v151_v11, %v147_v13 }
  0x47   : > { %v154_v15 = vmul.f32 %v152_v14, %v134_v0 }
  0x49   : > { %155 = vst [vmem:[%s133_s26] sm:$0xff] %v154_v15 }
  0x4a   : > { %361 = shalt.err (!%p358_p4)
}
  0x4b   : > { %256 = dma.vmem_to_hbm [thread:$0]  (%p462_p11), %s170_s27, 128, %s172_s28, %s157_s10  }
  0x4c PF: > { %s183_s13 = sand.u32 1, %s388_s6   ;;  %p546_p7 = scmp.ge.s32.totalorder %s400_s9, 2 }
  0x4d   : > { %s184_s14 = scalar_lea.sflag [#allocation4], %s183_s13 }
  0x4e   : > { %p263_p5 = pnand %p546_p7, %p466_p12 }
  0x50   : > { %p264_p8 = pneg %p263_p5 }
  0x52   : > { %383 = dma.done.wait (%p264_p8), %s184_s14, 128  }
  0x53   : > { %385 = vsyncadd (%p264_p8), %s184_s14, 4294967168  ;;  %p14_p10 = scmp.ge.s32.totalorder %s437_s12, 4   ;;  %s547_s6 = smov %s392_s7 }
  0x54   : > { %s548_s7 = smov %s396_s8  ;;  %s549_s8 = smov %s449_s15 }
  0x55   : > { %s550_s9 = smov %s437_s12  ;;  %16 = sbr.rel (!%p14_p10) target bundleno = 5 (0x5), region = 69 }
  0x5a   :  { %190 = vsyncpa [#allocation3], 1 }
  0x5b   :  { %192 = vsyncpa [#allocation3 + $0x1], 1 }
  0x5c   :  { %193 = vsyncpa [#allocation4], 1 }
  0x5d   :  { %195 = vsyncpa [#allocation4 + $0x1], 1 }

</bundles_post_ra>
